<compile_context>
chip_gen: v7x
topology: tpu7x:2x2x1
jax: 0.10.0
libtpu: 0.0.40
codegen_flags: <defaults>
</compile_context>

<pallas_src>
import jax
import jax.numpy as jnp
from jax.experimental import pallas as pl
from jax.experimental.pallas import tpu as pltpu

BN_EPS = 1e-5
LANE = 128


def vae_kernel(
    x_ref, eps_ref,
    w1_ref, b1_ref, g1_ref, bt1_ref,
    w2_ref, b2_ref, g2_ref, bt2_ref,
    wmv_ref, bmv_ref,
    dw1_ref, db1_ref, dw2_ref, db2_ref, dw3_ref, db3_ref,
    xhat_ref, ml_ref,
):
    lat_p = eps_ref.shape[1]  # padded latent width (static)

    x = x_ref[...]            # bf16, already padded/cast in wrapper

    # ---------------- Encoder ----------------
    # fc1 -> bn1 (training-mode batch stats, f32) -> relu
    h = jnp.dot(x, w1_ref[...], preferred_element_type=jnp.float32) + b1_ref[...]
    mu1 = jnp.mean(h, axis=0, keepdims=True)
    var1 = jnp.mean((h - mu1) ** 2, axis=0, keepdims=True)      # biased variance
    h = (h - mu1) * jax.lax.rsqrt(var1 + BN_EPS) * g1_ref[...] + bt1_ref[...]
    h = jnp.maximum(h, 0.0)

    # fc2 -> bn2 -> relu
    h = jnp.dot(h.astype(jnp.bfloat16), w2_ref[...],
                preferred_element_type=jnp.float32) + b2_ref[...]
    mu2 = jnp.mean(h, axis=0, keepdims=True)
    var2 = jnp.mean((h - mu2) ** 2, axis=0, keepdims=True)
    h = (h - mu2) * jax.lax.rsqrt(var2 + BN_EPS) * g2_ref[...] + bt2_ref[...]
    h = jnp.maximum(h, 0.0)

    # fused mean / log_var heads: one lane-wide matmul, static 128-aligned split
    ml = jnp.dot(h.astype(jnp.bfloat16), wmv_ref[...],
                 preferred_element_type=jnp.float32) + bmv_ref[...]
    mean = ml[:, :lat_p]
    log_var = ml[:, lat_p:]

    # ---------------- Reparametrize ----------------
    std = jnp.exp(0.5 * log_var)
    z = mean + std * eps_ref[...]          # epsilon ~ U[0,1) like torch.rand_like

    # ---------------- Decoder ----------------
    d = jnp.dot(z.astype(jnp.bfloat16), dw1_ref[...],
                preferred_element_type=jnp.float32) + db1_ref[...]
    d = jnp.maximum(d, 0.0)
    d = jnp.dot(d.astype(jnp.bfloat16), dw2_ref[...],
                preferred_element_type=jnp.float32) + db2_ref[...]
    d = jnp.maximum(d, 0.0)
    logits = jnp.dot(d.astype(jnp.bfloat16), dw3_ref[...],
                     preferred_element_type=jnp.float32) + db3_ref[...]
    x_hat = jax.nn.sigmoid(logits)         # EUP path, not a VALU divide

    xhat_ref[...] = x_hat.astype(xhat_ref.dtype)
    ml_ref[...] = ml.astype(ml_ref.dtype)  # packed [mean | log_var] slab


# ----------------------------------------------------------------------------
# Wrapper: PyTorch-style init, lane padding, head fusion, bf16 casts, slicing.
# ----------------------------------------------------------------------------

def init_params(key, input_dim, hidden_size, latent_size):
    """Deterministic PyTorch-style init. Linear weights stored pre-transposed (in, out)."""
    def linear(k, fan_in, fan_out):
        bound = 1.0 / jnp.sqrt(float(fan_in))
        kw, kb = jax.random.split(k)
        w = jax.random.uniform(kw, (fan_in, fan_out), jnp.float32, -bound, bound)
        b = jax.random.uniform(kb, (1, fan_out), jnp.float32, -bound, bound)
        return w, b

    ks = jax.random.split(key, 7)
    w1, b1 = linear(ks[0], input_dim, hidden_size)       # enc.fc1
    w2, b2 = linear(ks[1], hidden_size, hidden_size)     # enc.fc2
    wm, bm = linear(ks[2], hidden_size, latent_size)     # enc.fc_mean
    wv, bv = linear(ks[3], hidden_size, latent_size)     # enc.fc_log_var
    dw1, db1 = linear(ks[4], latent_size, hidden_size)   # dec.fc1
    dw2, db2 = linear(ks[5], hidden_size, hidden_size)   # dec.fc2
    dw3, db3 = linear(ks[6], hidden_size, input_dim)     # dec.fc3
    g1 = jnp.ones((1, hidden_size), jnp.float32)         # bn1 gamma
    bt1 = jnp.zeros((1, hidden_size), jnp.float32)       # bn1 beta
    g2 = jnp.ones((1, hidden_size), jnp.float32)         # bn2 gamma
    bt2 = jnp.zeros((1, hidden_size), jnp.float32)       # bn2 beta
    return (w1, b1, g1, bt1, w2, b2, g2, bt2, wm, bm, wv, bv,
            dw1, db1, dw2, db2, dw3, db3)


def _round_up(n, m):
    return ((n + m - 1) // m) * m


def _pad2(a, rows, cols):
    r, c = a.shape
    return jnp.pad(a, ((0, rows - r), (0, cols - c)))


@jax.jit
def trajectory_vae_forward(x, eps, params):
    (w1, b1, g1, bt1, w2, b2, g2, bt2, wm, bm, wv, bv,
     dw1, db1, dw2, db2, dw3, db3) = params

    batch, input_dim = x.shape
    hidden = w1.shape[1]
    latent = wm.shape[1]
    d_p = _round_up(input_dim, LANE)
    h_p = _round_up(hidden, LANE)
    l_p = _round_up(latent, LANE)

    bf16 = jnp.bfloat16

    # Lane-pad everything; matmul operands (x and weights) pre-cast to bf16.
    # Zero padding keeps the real columns bit-identical: padded hidden columns
    # produce 0 through BN/ReLU, padded latent columns produce z=0, padded
    # weight rows contribute nothing.
    x_p = _pad2(x, batch, d_p).astype(bf16)
    eps_p = _pad2(eps, batch, l_p)                       # zeros in padding -> z pad = 0

    w1_p = _pad2(w1, d_p, h_p).astype(bf16)
    b1_p = _pad2(b1, 1, h_p)
    g1_p = _pad2(g1, 1, h_p)
    bt1_p = _pad2(bt1, 1, h_p)

    w2_p = _pad2(w2, h_p, h_p).astype(bf16)
    b2_p = _pad2(b2, 1, h_p)
    g2_p = _pad2(g2, 1, h_p)
    bt2_p = _pad2(bt2, 1, h_p)

    # Fused mean | log_var head: single (h_p, 2*l_p) weight, one matmul in-kernel.
    wmv_p = jnp.concatenate(
        [_pad2(wm, h_p, l_p), _pad2(wv, h_p, l_p)], axis=1).astype(bf16)
    bmv_p = jnp.concatenate([_pad2(bm, 1, l_p), _pad2(bv, 1, l_p)], axis=1)

    dw1_p = _pad2(dw1, l_p, h_p).astype(bf16)
    db1_p = _pad2(db1, 1, h_p)
    dw2_p = _pad2(dw2, h_p, h_p).astype(bf16)
    db2_p = _pad2(db2, 1, h_p)
    dw3_p = _pad2(dw3, h_p, d_p).astype(bf16)
    db3_p = _pad2(db3, 1, d_p)

    inputs = (x_p, eps_p,
              w1_p, b1_p, g1_p, bt1_p,
              w2_p, b2_p, g2_p, bt2_p,
              wmv_p, bmv_p,
              dw1_p, db1_p, dw2_p, db2_p, dw3_p, db3_p)

    vmem_spec = pl.BlockSpec(memory_space=pltpu.MemorySpace.VMEM)
    out_shape = (
        jax.ShapeDtypeStruct((batch, d_p), jnp.float32),       # x_hat (padded)
        jax.ShapeDtypeStruct((batch, 2 * l_p), jnp.float32),   # [mean | log_var]
    )

    xhat_p, ml = pl.pallas_call(
        vae_kernel,
        out_shape=out_shape,
        in_specs=[vmem_spec] * len(inputs),
        out_specs=(vmem_spec, vmem_spec),
        compiler_params=pltpu.CompilerParams(
            vmem_limit_bytes=32 * 1024 * 1024),   # safe on v5e/v6e/v7x scoped VMEM
    )(*inputs)

    x_hat = xhat_p[:, :input_dim]
    mean = ml[:, :latent]
    log_var = ml[:, l_p:l_p + latent]
    return x_hat, mean, log_var


if __name__ == "__main__":
    # Small shapes consistent with the module: (batch, input_dim) MLP input.
    batch, input_dim, hidden_size, latent_size = 8, 16, 32, 8

    key = jax.random.PRNGKey(0)
    k_params, k_x, k_eps = jax.random.split(key, 3)

    params = init_params(k_params, input_dim, hidden_size, latent_size)
    x = jax.random.normal(k_x, (batch, input_dim), jnp.float32)
    # epsilon ~ U[0,1) to match torch.rand_like in reparametrize
    eps = jax.random.uniform(k_eps, (batch, latent_size), jnp.float32)

    x_hat, mean, log_var = trajectory_vae_forward(x, eps, params)
    jax.block_until_ready((x_hat, mean, log_var))

    assert x_hat.shape == (batch, input_dim)
    assert mean.shape == (batch, latent_size)
    assert log_var.shape == (batch, latent_size)
    assert bool(jnp.all(jnp.isfinite(x_hat)))
    assert bool(jnp.all((x_hat >= 0.0) & (x_hat <= 1.0)))
    print("KERNEL_OK")
</pallas_src>

<mosaic_0001>
module attributes {stable_mosaic.version = 11 : i64} {
  func.func @vae_kernel(%arg0: memref<8x128xbf16, #tpu.memory_space<vmem>>, %arg1: memref<8x128xf32, #tpu.memory_space<vmem>>, %arg2: memref<128x128xbf16, #tpu.memory_space<vmem>>, %arg3: memref<1x128xf32, #tpu.memory_space<vmem>>, %arg4: memref<1x128xf32, #tpu.memory_space<vmem>>, %arg5: memref<1x128xf32, #tpu.memory_space<vmem>>, %arg6: memref<128x128xbf16, #tpu.memory_space<vmem>>, %arg7: memref<1x128xf32, #tpu.memory_space<vmem>>, %arg8: memref<1x128xf32, #tpu.memory_space<vmem>>, %arg9: memref<1x128xf32, #tpu.memory_space<vmem>>, %arg10: memref<128x256xbf16, #tpu.memory_space<vmem>>, %arg11: memref<1x256xf32, #tpu.memory_space<vmem>>, %arg12: memref<128x128xbf16, #tpu.memory_space<vmem>>, %arg13: memref<1x128xf32, #tpu.memory_space<vmem>>, %arg14: memref<128x128xbf16, #tpu.memory_space<vmem>>, %arg15: memref<1x128xf32, #tpu.memory_space<vmem>>, %arg16: memref<128x128xbf16, #tpu.memory_space<vmem>>, %arg17: memref<1x128xf32, #tpu.memory_space<vmem>>, %arg18: memref<8x128xf32, #tpu.memory_space<vmem>>, %arg19: memref<8x256xf32, #tpu.memory_space<vmem>>) attributes {dimension_semantics = [], scalar_prefetch = 0 : i64, scratch_operands = 0 : i64, tpu.core_type = #tpu.core_type<tc>} {
    %c0 = arith.constant 0 : index
    %c0_0 = arith.constant 0 : index
    %0 = vector.load %arg0[%c0, %c0_0] : memref<8x128xbf16, #tpu.memory_space<vmem>>, vector<8x128xbf16>
    %c0_1 = arith.constant 0 : index
    %c0_2 = arith.constant 0 : index
    %1 = vector.load %arg2[%c0_1, %c0_2] : memref<128x128xbf16, #tpu.memory_space<vmem>>, vector<128x128xbf16>
    %cst = arith.constant dense<0.000000e+00> : vector<8x128xf32>
    %2 = tpu.matmul %0, %1, %cst {dimension_numbers = #tpu.dot_dimension_numbers<[1], [0], [0], [1], [0, 0, 1, 1], [], []>} : vector<8x128xbf16>, vector<128x128xbf16>, vector<8x128xf32> -> vector<8x128xf32>
    %c0_3 = arith.constant 0 : index
    %c0_4 = arith.constant 0 : index
    %3 = vector.load %arg3[%c0_3, %c0_4] : memref<1x128xf32, #tpu.memory_space<vmem>>, vector<1x128xf32>
    %4 = vector.broadcast %3 : vector<1x128xf32> to vector<8x128xf32>
    %5 = arith.addf %2, %4 : vector<8x128xf32>
    %cst_5 = arith.constant dense<0.000000e+00> : vector<128xf32>
    %6 = vector.multi_reduction <add>, %5, %cst_5 [0] : vector<8x128xf32> to vector<128xf32>
    %7 = vector.shape_cast %6 : vector<128xf32> to vector<1x128xf32>
    %cst_6 = arith.constant 8.000000e+00 : f32
    %8 = vector.broadcast %cst_6 : f32 to vector<1x128xf32>
    %9 = arith.divf %7, %8 : vector<1x128xf32>
    %10 = vector.broadcast %9 : vector<1x128xf32> to vector<8x128xf32>
    %11 = arith.subf %5, %10 : vector<8x128xf32>
    %12 = arith.mulf %11, %11 : vector<8x128xf32>
    %cst_7 = arith.constant dense<0.000000e+00> : vector<128xf32>
    %13 = vector.multi_reduction <add>, %12, %cst_7 [0] : vector<8x128xf32> to vector<128xf32>
    %14 = vector.shape_cast %13 : vector<128xf32> to vector<1x128xf32>
    %cst_8 = arith.constant 8.000000e+00 : f32
    %15 = vector.broadcast %cst_8 : f32 to vector<1x128xf32>
    %16 = arith.divf %14, %15 : vector<1x128xf32>
    %17 = vector.broadcast %9 : vector<1x128xf32> to vector<8x128xf32>
    %18 = arith.subf %5, %17 : vector<8x128xf32>
    %cst_9 = arith.constant 9.99999974E-6 : f32
    %19 = vector.broadcast %cst_9 : f32 to vector<1x128xf32>
    %20 = arith.addf %16, %19 : vector<1x128xf32>
    %21 = math.rsqrt %20 : vector<1x128xf32>
    %22 = vector.broadcast %21 : vector<1x128xf32> to vector<8x128xf32>
    %23 = arith.mulf %18, %22 : vector<8x128xf32>
    %c0_10 = arith.constant 0 : index
    %c0_11 = arith.constant 0 : index
    %24 = vector.load %arg4[%c0_10, %c0_11] : memref<1x128xf32, #tpu.memory_space<vmem>>, vector<1x128xf32>
    %25 = vector.broadcast %24 : vector<1x128xf32> to vector<8x128xf32>
    %26 = arith.mulf %23, %25 : vector<8x128xf32>
    %c0_12 = arith.constant 0 : index
    %c0_13 = arith.constant 0 : index
    %27 = vector.load %arg5[%c0_12, %c0_13] : memref<1x128xf32, #tpu.memory_space<vmem>>, vector<1x128xf32>
    %28 = vector.broadcast %27 : vector<1x128xf32> to vector<8x128xf32>
    %29 = arith.addf %26, %28 : vector<8x128xf32>
    %cst_14 = arith.constant 0.000000e+00 : f32
    %30 = vector.broadcast %cst_14 : f32 to vector<8x128xf32>
    %31 = arith.maximumf %29, %30 : vector<8x128xf32>
    %32 = arith.truncf %31 : vector<8x128xf32> to vector<8x128xbf16>
    %c0_15 = arith.constant 0 : index
    %c0_16 = arith.constant 0 : index
    %33 = vector.load %arg6[%c0_15, %c0_16] : memref<128x128xbf16, #tpu.memory_space<vmem>>, vector<128x128xbf16>
    %cst_17 = arith.constant dense<0.000000e+00> : vector<8x128xf32>
    %34 = tpu.matmul %32, %33, %cst_17 {dimension_numbers = #tpu.dot_dimension_numbers<[1], [0], [0], [1], [0, 0, 1, 1], [], []>} : vector<8x128xbf16>, vector<128x128xbf16>, vector<8x128xf32> -> vector<8x128xf32>
    %c0_18 = arith.constant 0 : index
    %c0_19 = arith.constant 0 : index
    %35 = vector.load %arg7[%c0_18, %c0_19] : memref<1x128xf32, #tpu.memory_space<vmem>>, vector<1x128xf32>
    %36 = vector.broadcast %35 : vector<1x128xf32> to vector<8x128xf32>
    %37 = arith.addf %34, %36 : vector<8x128xf32>
    %cst_20 = arith.constant dense<0.000000e+00> : vector<128xf32>
    %38 = vector.multi_reduction <add>, %37, %cst_20 [0] : vector<8x128xf32> to vector<128xf32>
    %39 = vector.shape_cast %38 : vector<128xf32> to vector<1x128xf32>
    %cst_21 = arith.constant 8.000000e+00 : f32
    %40 = vector.broadcast %cst_21 : f32 to vector<1x128xf32>
    %41 = arith.divf %39, %40 : vector<1x128xf32>
    %42 = vector.broadcast %41 : vector<1x128xf32> to vector<8x128xf32>
    %43 = arith.subf %37, %42 : vector<8x128xf32>
    %44 = arith.mulf %43, %43 : vector<8x128xf32>
    %cst_22 = arith.constant dense<0.000000e+00> : vector<128xf32>
    %45 = vector.multi_reduction <add>, %44, %cst_22 [0] : vector<8x128xf32> to vector<128xf32>
    %46 = vector.shape_cast %45 : vector<128xf32> to vector<1x128xf32>
    %cst_23 = arith.constant 8.000000e+00 : f32
    %47 = vector.broadcast %cst_23 : f32 to vector<1x128xf32>
    %48 = arith.divf %46, %47 : vector<1x128xf32>
    %49 = vector.broadcast %41 : vector<1x128xf32> to vector<8x128xf32>
    %50 = arith.subf %37, %49 : vector<8x128xf32>
    %cst_24 = arith.constant 9.99999974E-6 : f32
    %51 = vector.broadcast %cst_24 : f32 to vector<1x128xf32>
    %52 = arith.addf %48, %51 : vector<1x128xf32>
    %53 = math.rsqrt %52 : vector<1x128xf32>
    %54 = vector.broadcast %53 : vector<1x128xf32> to vector<8x128xf32>
    %55 = arith.mulf %50, %54 : vector<8x128xf32>
    %c0_25 = arith.constant 0 : index
    %c0_26 = arith.constant 0 : index
    %56 = vector.load %arg8[%c0_25, %c0_26] : memref<1x128xf32, #tpu.memory_space<vmem>>, vector<1x128xf32>
    %57 = vector.broadcast %56 : vector<1x128xf32> to vector<8x128xf32>
    %58 = arith.mulf %55, %57 : vector<8x128xf32>
    %c0_27 = arith.constant 0 : index
    %c0_28 = arith.constant 0 : index
    %59 = vector.load %arg9[%c0_27, %c0_28] : memref<1x128xf32, #tpu.memory_space<vmem>>, vector<1x128xf32>
    %60 = vector.broadcast %59 : vector<1x128xf32> to vector<8x128xf32>
    %61 = arith.addf %58, %60 : vector<8x128xf32>
    %cst_29 = arith.constant 0.000000e+00 : f32
    %62 = vector.broadcast %cst_29 : f32 to vector<8x128xf32>
    %63 = arith.maximumf %61, %62 : vector<8x128xf32>
    %64 = arith.truncf %63 : vector<8x128xf32> to vector<8x128xbf16>
    %c0_30 = arith.constant 0 : index
    %c0_31 = arith.constant 0 : index
    %65 = vector.load %arg10[%c0_30, %c0_31] : memref<128x256xbf16, #tpu.memory_space<vmem>>, vector<128x256xbf16>
    %cst_32 = arith.constant dense<0.000000e+00> : vector<8x256xf32>
    %66 = tpu.matmul %64, %65, %cst_32 {dimension_numbers = #tpu.dot_dimension_numbers<[1], [0], [0], [1], [0, 0, 1, 1], [], []>} : vector<8x128xbf16>, vector<128x256xbf16>, vector<8x256xf32> -> vector<8x256xf32>
    %c0_33 = arith.constant 0 : index
    %c0_34 = arith.constant 0 : index
    %67 = vector.load %arg11[%c0_33, %c0_34] : memref<1x256xf32, #tpu.memory_space<vmem>>, vector<1x256xf32>
    %68 = vector.broadcast %67 : vector<1x256xf32> to vector<8x256xf32>
    %69 = arith.addf %66, %68 : vector<8x256xf32>
    %70 = vector.extract_strided_slice %69 {offsets = [0, 0], sizes = [8, 128], strides = [1, 1]} : vector<8x256xf32> to vector<8x128xf32>
    %71 = vector.extract_strided_slice %69 {offsets = [0, 128], sizes = [8, 128], strides = [1, 1]} : vector<8x256xf32> to vector<8x128xf32>
    %cst_35 = arith.constant 5.000000e-01 : f32
    %72 = vector.broadcast %cst_35 : f32 to vector<8x128xf32>
    %73 = arith.mulf %72, %71 : vector<8x128xf32>
    %74 = math.exp %73 : vector<8x128xf32>
    %c0_36 = arith.constant 0 : index
    %c0_37 = arith.constant 0 : index
    %75 = vector.load %arg1[%c0_36, %c0_37] : memref<8x128xf32, #tpu.memory_space<vmem>>, vector<8x128xf32>
    %76 = arith.mulf %74, %75 : vector<8x128xf32>
    %77 = arith.addf %70, %76 : vector<8x128xf32>
    %78 = arith.truncf %77 : vector<8x128xf32> to vector<8x128xbf16>
    %c0_38 = arith.constant 0 : index
    %c0_39 = arith.constant 0 : index
    %79 = vector.load %arg12[%c0_38, %c0_39] : memref<128x128xbf16, #tpu.memory_space<vmem>>, vector<128x128xbf16>
    %cst_40 = arith.constant dense<0.000000e+00> : vector<8x128xf32>
    %80 = tpu.matmul %78, %79, %cst_40 {dimension_numbers = #tpu.dot_dimension_numbers<[1], [0], [0], [1], [0, 0, 1, 1], [], []>} : vector<8x128xbf16>, vector<128x128xbf16>, vector<8x128xf32> -> vector<8x128xf32>
    %c0_41 = arith.constant 0 : index
    %c0_42 = arith.constant 0 : index
    %81 = vector.load %arg13[%c0_41, %c0_42] : memref<1x128xf32, #tpu.memory_space<vmem>>, vector<1x128xf32>
    %82 = vector.broadcast %81 : vector<1x128xf32> to vector<8x128xf32>
    %83 = arith.addf %80, %82 : vector<8x128xf32>
    %cst_43 = arith.constant 0.000000e+00 : f32
    %84 = vector.broadcast %cst_43 : f32 to vector<8x128xf32>
    %85 = arith.maximumf %83, %84 : vector<8x128xf32>
    %86 = arith.truncf %85 : vector<8x128xf32> to vector<8x128xbf16>
    %c0_44 = arith.constant 0 : index
    %c0_45 = arith.constant 0 : index
    %87 = vector.load %arg14[%c0_44, %c0_45] : memref<128x128xbf16, #tpu.memory_space<vmem>>, vector<128x128xbf16>
    %cst_46 = arith.constant dense<0.000000e+00> : vector<8x128xf32>
    %88 = tpu.matmul %86, %87, %cst_46 {dimension_numbers = #tpu.dot_dimension_numbers<[1], [0], [0], [1], [0, 0, 1, 1], [], []>} : vector<8x128xbf16>, vector<128x128xbf16>, vector<8x128xf32> -> vector<8x128xf32>
    %c0_47 = arith.constant 0 : index
    %c0_48 = arith.constant 0 : index
    %89 = vector.load %arg15[%c0_47, %c0_48] : memref<1x128xf32, #tpu.memory_space<vmem>>, vector<1x128xf32>
    %90 = vector.broadcast %89 : vector<1x128xf32> to vector<8x128xf32>
    %91 = arith.addf %88, %90 : vector<8x128xf32>
    %cst_49 = arith.constant 0.000000e+00 : f32
    %92 = vector.broadcast %cst_49 : f32 to vector<8x128xf32>
    %93 = arith.maximumf %91, %92 : vector<8x128xf32>
    %94 = arith.truncf %93 : vector<8x128xf32> to vector<8x128xbf16>
    %c0_50 = arith.constant 0 : index
    %c0_51 = arith.constant 0 : index
    %95 = vector.load %arg16[%c0_50, %c0_51] : memref<128x128xbf16, #tpu.memory_space<vmem>>, vector<128x128xbf16>
    %cst_52 = arith.constant dense<0.000000e+00> : vector<8x128xf32>
    %96 = tpu.matmul %94, %95, %cst_52 {dimension_numbers = #tpu.dot_dimension_numbers<[1], [0], [0], [1], [0, 0, 1, 1], [], []>} : vector<8x128xbf16>, vector<128x128xbf16>, vector<8x128xf32> -> vector<8x128xf32>
    %c0_53 = arith.constant 0 : index
    %c0_54 = arith.constant 0 : index
    %97 = vector.load %arg17[%c0_53, %c0_54] : memref<1x128xf32, #tpu.memory_space<vmem>>, vector<1x128xf32>
    %98 = vector.broadcast %97 : vector<1x128xf32> to vector<8x128xf32>
    %99 = arith.addf %96, %98 : vector<8x128xf32>
    %100 = arith.negf %99 : vector<8x128xf32>
    %101 = math.exp %100 : vector<8x128xf32>
    %cst_55 = arith.constant 1.000000e+00 : f32
    %102 = vector.broadcast %cst_55 : f32 to vector<8x128xf32>
    %103 = arith.addf %102, %101 : vector<8x128xf32>
    %104 = arith.divf %102, %103 : vector<8x128xf32>
    %c0_56 = arith.constant 0 : index
    %c0_57 = arith.constant 0 : index
    %105 = vector.load %arg18[%c0_56, %c0_57] : memref<8x128xf32, #tpu.memory_space<vmem>>, vector<8x128xf32>
    tpu.vector_store %arg18[%c0_56, %c0_57], %104 {strides = array<i32>} : memref<8x128xf32, #tpu.memory_space<vmem>>, vector<8x128xf32>,
    %c0_58 = arith.constant 0 : index
    %c0_59 = arith.constant 0 : index
    %106 = vector.load %arg19[%c0_58, %c0_59] : memref<8x256xf32, #tpu.memory_space<vmem>>, vector<8x256xf32>
    tpu.vector_store %arg19[%c0_58, %c0_59], %69 {strides = array<i32>} : memref<8x256xf32, #tpu.memory_space<vmem>>, vector<8x256xf32>,
    return
  }
}

</mosaic_0001>

<bundles_post_ra>
// kernel: trajectory_vae_forward.1
= control target key start
LH: loop header
LB: loop body
LE: loop exit
PB: predicated region body
PF: predicated region fallthrough
CT: control target
= control target key end

     0   :  { %s1570_s0 = inlined_call_operand.vmem [shape: bf16[8,128], index: 0, kind: input, shape index: {}]   ;;  %s1571_s1 = inlined_call_operand.vmem [shape: f32[8,128], index: 1, kind: input, shape index: {}]   ;;  %s1572_s2 = inlined_call_operand.vmem [shape: bf16[128,128], index: 2, kind: input, shape index: {}]   ;;  %s1573_s3 = inlined_call_operand.vmem [shape: f32[1,128], index: 3, kind: input, shape index: {}]   ;;  %s1574_s4 = inlined_call_operand.vmem [shape: f32[1,128], index: 4, kind: input, shape index: {}]   ;;  %s1575_s5 = inlined_call_operand.vmem [shape: f32[1,128], index: 5, kind: input, shape index: {}]   ;;  %s1576_s6 = inlined_call_operand.vmem [shape: bf16[128,128], index: 6, kind: input, shape index: {}]   ;;  %s1577_s7 = inlined_call_operand.vmem [shape: f32[1,128], index: 7, kind: input, shape index: {}]   ;;  %s1578_s8 = inlined_call_operand.vmem [shape: f32[1,128], index: 8, kind: input, shape index: {}]   ;;  %s1579_s9 = inlined_call_operand.vmem [shape: f32[1,128], index: 9, kind: input, shape index: {}]   ;;  %s1580_s10 = inlined_call_operand.vmem [shape: bf16[128,256], index: 10, kind: input, shape index: {}]   ;;  %s1581_s11 = inlined_call_operand.vmem [shape: f32[1,256], index: 11, kind: input, shape index: {}]   ;;  %s1582_s12 = inlined_call_operand.vmem [shape: bf16[128,128], index: 12, kind: input, shape index: {}]   ;;  %s1583_s13 = inlined_call_operand.vmem [shape: f32[1,128], index: 13, kind: input, shape index: {}]   ;;  %s1584_s14 = inlined_call_operand.vmem [shape: bf16[128,128], index: 14, kind: input, shape index: {}]   ;;  %s1585_s15 = inlined_call_operand.vmem [shape: f32[1,128], index: 15, kind: input, shape index: {}]   ;;  %s1586_s16 = inlined_call_operand.vmem [shape: bf16[128,128], index: 16, kind: input, shape index: {}]   ;;  %s1587_s17 = inlined_call_operand.vmem [shape: f32[1,128], index: 17, kind: input, shape index: {}]   ;;  %s1588_s18 = inlined_call_operand.hbm [shape: f32[8,128], index: 18, kind: output, shape index: {0}]   ;;  %s1589_s19 = inlined_call_operand.vmem [shape: f32[8,256], index: 19, kind: output, shape index: {1}]  }
   0x1   :  { %1591 = sst [smem:[#allocation5_spill]] %s1570_s0 }
   0x2   :  { %1592 = sst [smem:[#allocation6_spill]] %s1571_s1 }
   0x3   :  { %1593 = sst [smem:[#allocation7_spill]] %s1572_s2 }
   0x4   :  { %1594 = sst [smem:[#allocation8_spill]] %s1573_s3 }
   0x5   :  { %s1595_s20 = sld [smem:[#allocation7_spill]]  ;;  %v1194_v1 = vmov 0.0   ;;  %vm1195_vm0 = vmmov 0   ;;  %s1596_s22 = sld [smem:[#allocation5_spill]] }
   0x6   :  { %992 = vmatprep.subr.bf16.mxu0 %v1194_v1  ;;  %1012 = vmatprep.subr.bf16.mxu1 %v1194_v1 }
   0x7   :  { %1008 = vmatprep.mubr.msk.bf16.mxu0 %vm1195_vm0, %v1194_v1  ;;  %1028 = vmatprep.mubr.msk.bf16.mxu1 %vm1195_vm0, %v1194_v1 }
   0xb   :  { %v1096_v0 = vld [vmem:[%s1595_s20] sm:$0xff]   ;;  %v1097_v2 = vld [vmem:[%s1595_s20 + $0x8] sm:$0xff]   ;;  %v1098_v3 = vld [vmem:[%s1595_s20 + $0x10] sm:$0xff]  }
   0xc   :  { %993 = vmatpush3.bf16.msra.mxu0 %v1096_v0  ;;  %v1099_v4 = vld [vmem:[%s1595_s20 + $0x18] sm:$0xff]   ;;  %v1100_v5 = vld [vmem:[%s1595_s20 + $0x20] sm:$0xff]   ;;  %v1101_v6 = vld [vmem:[%s1595_s20 + $0x28] sm:$0xff]  }
   0xd   :  { %994 = vmatprep.subr.bf16.mxu0 %v1194_v1  ;;  %v1102_v7 = vld [vmem:[%s1595_s20 + $0x30] sm:$0xff]   ;;  %v1103_v8 = vld [vmem:[%s1595_s20 + $0x38] sm:$0xff]   ;;  %v63_v9 = vld [vmem:[%s1596_s22] sm:$0xf] }
  0x10   :  { %995 = vmatpush3.bf16.msra.mxu0 %v1097_v2 }
  0x11   :  { %996 = vmatprep.subr.bf16.mxu0 %v1194_v1 }
  0x14   :  { %997 = vmatpush3.bf16.msra.mxu0 %v1098_v3 }
  0x15   :  { %998 = vmatprep.subr.bf16.mxu0 %v1194_v1 }
  0x18   :  { %999 = vmatpush3.bf16.msra.mxu0 %v1099_v4 }
  0x19   :  { %1000 = vmatprep.subr.bf16.mxu0 %v1194_v1 }
  0x1c   :  { %1001 = vmatpush3.bf16.msra.mxu0 %v1100_v5 }
  0x1d   :  { %1002 = vmatprep.subr.bf16.mxu0 %v1194_v1 }
  0x20   :  { %1003 = vmatpush3.bf16.msra.mxu0 %v1101_v6 }
  0x21   :  { %1004 = vmatprep.subr.bf16.mxu0 %v1194_v1 }
  0x24   :  { %1005 = vmatpush3.bf16.msra.mxu0 %v1102_v7 }
  0x25   :  { %1006 = vmatprep.subr.bf16.mxu0 %v1194_v1 }
  0x28   :  { %1007 = vmatpush3.bf16.msra.mxu0 %v1103_v8 }
  0x2b   :  { %1009 = vmatmul.mubr.bf16.vlgmr.msra.gmra.mrb[0].mxu0 %v63_v9 }
  0x2c   :  { %25 = vsyncpa [#allocation3], 0  ;;  %v1104_v10 = vld [vmem:[%s1576_s6] sm:$0xff]   ;;  %v1105_v11 = vld [vmem:[%s1576_s6 + $0x8] sm:$0xff]   ;;  %s1597_s25 = sld [smem:[#allocation8_spill]]  ;;  %v1196_v2 = vmov 0  }
  0x2d   :  { %1013 = vmatpush3.bf16.msra.mxu1 %v1104_v10  ;;  %v1106_v12 = vld [vmem:[%s1576_s6 + $0x10] sm:$0xff]   ;;  %v1107_v13 = vld [vmem:[%s1576_s6 + $0x18] sm:$0xff]   ;;  %v1108_v14 = vld [vmem:[%s1576_s6 + $0x20] sm:$0xff]   ;;  %501 = vmatprep.mubr.bf16.mxu0 %v1196_v2  ;;  %s1598_s2 = sld [smem:[#allocation6_spill]] }
  0x2e   :  { %1014 = vmatprep.subr.bf16.mxu1 %v1194_v1  ;;  %v1109_v15 = vld [vmem:[%s1576_s6 + $0x28] sm:$0xff]   ;;  %v1110_v16 = vld [vmem:[%s1576_s6 + $0x30] sm:$0xff]   ;;  %v1111_v17 = vld [vmem:[%s1576_s6 + $0x38] sm:$0xff]  }
  0x2f   :  { %v890_v42 = vld [vmem:[%s1574_s4] ss:$0 sm:$0xff]  ;;  %v1114_v49 = vld [vmem:[%s1580_s10 + $0x4] ss:$8 sps:$4 sm:$0xff]   ;;  %v1117_v51 = vld [vmem:[%s1580_s10 + $0x14] ss:$8 sps:$4 sm:$0xff]  }
  0x30   :  { %v891_v44 = vld [vmem:[%s1575_s5] ss:$0 sm:$0xff]  ;;  %469 = vmatprep.subr.bf16.mxu0 %v1114_v49  ;;  %v1115_v52 = vld [vmem:[%s1580_s10 + $0x10] ss:$8 sps:$4 sm:$0xff]   ;;  %v1120_v53 = vld [vmem:[%s1580_s10 + $0x24] ss:$8 sps:$4 sm:$0xff]  }
  0x31   :  { %1015 = vmatpush3.bf16.msra.mxu1 %v1105_v11  ;;  %v1112_v50 = vld [vmem:[%s1580_s10] ss:$8 sps:$4 sm:$0xff]   ;;  %v1123_v55 = vld [vmem:[%s1580_s10 + $0x34] ss:$8 sps:$4 sm:$0xff]   ;;  %v1121_v56 = vld [vmem:[%s1580_s10 + $0x30] ss:$8 sps:$4 sm:$0xff]  }
  0x32   :  { %1016 = vmatprep.subr.bf16.mxu1 %v1194_v1  ;;  %v881_v18 = vld [vmem:[%s1597_s25] ss:$0 sm:$0xff]  ;;  %470 = vmatpush1.bf16.msra.mxu0 %v1112_v50  ;;  %v1126_v57 = vld [vmem:[%s1580_s10 + $0x44] ss:$8 sps:$4 sm:$0xff]   ;;  %v1129_v59 = vld [vmem:[%s1580_s10 + $0x54] ss:$8 sps:$4 sm:$0xff]  }
  0x33   :  { %471 = vmatprep.subr.bf16.mxu0 %v1117_v51  ;;  %v1118_v54 = vld [vmem:[%s1580_s10 + $0x20] ss:$8 sps:$4 sm:$0xff]   ;;  %v1127_v60 = vld [vmem:[%s1580_s10 + $0x50] ss:$8 sps:$4 sm:$0xff]   ;;  %v1132_v61 = vld [vmem:[%s1580_s10 + $0x64] ss:$8 sps:$4 sm:$0xff]  }
  0x34   :  { %v1124_v58 = vld [vmem:[%s1580_s10 + $0x40] ss:$8 sps:$4 sm:$0xff]   ;;  %v1135_v63 = vld [vmem:[%s1580_s10 + $0x74] ss:$8 sps:$4 sm:$0xff]   ;;  %v1133_v0 = vld [vmem:[%s1580_s10 + $0x70] ss:$8 sps:$4 sm:$0xff]  }
  0x35   :  { %1017 = vmatpush3.bf16.msra.mxu1 %v1106_v12  ;;  %v1130_v62 = vld [vmem:[%s1580_s10 + $0x60] ss:$8 sps:$4 sm:$0xff]  }
  0x36   :  { %1018 = vmatprep.subr.bf16.mxu1 %v1194_v1  ;;  %472 = vmatpush1.bf16.msra.mxu0 %v1115_v52  ;;  %v1136_v3 = vld [vmem:[%s1582_s12] sm:$0xff]   ;;  %v1137_v4 = vld [vmem:[%s1582_s12 + $0x8] sm:$0xff]  }
  0x37   :  { %473 = vmatprep.subr.bf16.mxu0 %v1120_v53  ;;  %v892_v5 = vld [vmem:[%s1577_s7] ss:$0 sm:$0xff] }
  0x38   :  { %v377_v51 = vld [vmem:[%s1581_s11] sm:$0x3] }
  0x39   :  { %1019 = vmatpush3.bf16.msra.mxu1 %v1107_v13 }
  0x3a   :  { %1020 = vmatprep.subr.bf16.mxu1 %v1194_v1  ;;  %474 = vmatpush1.bf16.msra.mxu0 %v1118_v54 }
  0x3b   :  { %475 = vmatprep.subr.bf16.mxu0 %v1123_v55 }
  0x3d   :  { %1021 = vmatpush3.bf16.msra.mxu1 %v1108_v14 }
  0x3e   :  { %1022 = vmatprep.subr.bf16.mxu1 %v1194_v1  ;;  %476 = vmatpush1.bf16.msra.mxu0 %v1121_v56 }
  0x3f   :  { %477 = vmatprep.subr.bf16.mxu0 %v1126_v57 }
  0x41   :  { %1023 = vmatpush3.bf16.msra.mxu1 %v1109_v15 }
  0x42   :  { %1024 = vmatprep.subr.bf16.mxu1 %v1194_v1  ;;  %478 = vmatpush1.bf16.msra.mxu0 %v1124_v58 }
  0x43   :  { %479 = vmatprep.subr.bf16.mxu0 %v1129_v59 }
  0x45   :  { %1025 = vmatpush3.bf16.msra.mxu1 %v1110_v16 }
  0x46   :  { %1026 = vmatprep.subr.bf16.mxu1 %v1194_v1  ;;  %480 = vmatpush1.bf16.msra.mxu0 %v1127_v60 }
  0x47   :  { %481 = vmatprep.subr.bf16.mxu0 %v1132_v61 }
  0x49   :  { %1027 = vmatpush3.bf16.msra.mxu1 %v1111_v17 }
  0x4a   :  { %1032 = vmatprep.subr.bf16.mxu1 %v1194_v1  ;;  %482 = vmatpush1.bf16.msra.mxu0 %v1130_v62 }
  0x4b   :  { %483 = vmatprep.subr.bf16.mxu0 %v1135_v63  ;;  %v513_v63 = vld [vmem:[%s1598_s2] sm:$0xff] }
  0x4e   :  { %484 = vmatpush1.bf16.msra.mxu0 %v1133_v0 }
  0x4f   :  { %1052 = vmatprep.subr.bf16.mxu0 %v1194_v1 }
  0xfe   :  { %v169_v19 = vpop.f32.mrb[0].mxu0 }
  0xff   :  { %v170_v20 = vadd.f32 %v881_v18, %v169_v19  ;;  %v1010_v21 = vpop.f32.mrb[1].mxu0 }
 0x100   :  { %v172_v22 = vpop.f32.mrb[2].mxu0 }
 0x101   :  { %v175_v23 = vrot.slane %v170_v20, 4  ;;  %v1011_v24 = vpop.f32.mrb[3].mxu0 }
 0x103   :  { %v176_v25 = vadd.f32 %v175_v23, %v170_v20 }
 0x105   :  { %v177_v26 = vrot.slane %v176_v25, 2 }
 0x107   :  { %v178_v27 = vadd.f32 %v177_v26, %v176_v25 }
 0x109   :  { %v179_v28 = vrot.slane %v178_v27, 1 }
 0x10b   :  { %v180_v29 = vadd.f32 %v179_v28, %v178_v27 }
 0x10d   :  { %v182_v30 = vmul.f32 0.125, %v180_v29  ;;  %v901_v29 = vld [vmem:[%s1578_s8] ss:$0 sm:$0xff] }
 0x10f   :  { %v183_v31 = vsub.f32 %v170_v20, %v182_v30 }
 0x111   :  { %v184_v32 = vmul.f32 %v183_v31, %v183_v31 }
 0x113   :  { %v185_v33 = vrot.slane %v184_v32, 4 }
 0x115   :  { %v186_v34 = vadd.f32 %v185_v33, %v184_v32 }
 0x117   :  { %v187_v35 = vrot.slane %v186_v34, 2 }
 0x119   :  { %v188_v36 = vadd.f32 %v187_v35, %v186_v34 }
 0x11b   :  { %v189_v37 = vrot.slane %v188_v36, 1 }
 0x11d   :  { %v190_v38 = vadd.f32 %v189_v37, %v188_v36  ;;  %v1138_v36 = vld [vmem:[%s1582_s12 + $0x10] sm:$0xff]   ;;  %v1139_v37 = vld [vmem:[%s1582_s12 + $0x18] sm:$0xff]  }
 0x11f   :  { %v191_v39 = vmul.f32 0.125, %v190_v38  ;;  %v1140_v38 = vld [vmem:[%s1582_s12 + $0x20] sm:$0xff]  }
 0x121   :  { %v192_v40 = vadd.f32 1e-05, %v191_v39  ;;  %v1141_v39 = vld [vmem:[%s1582_s12 + $0x28] sm:$0xff]  }
 0x123   :  { %1160 = vrsqrt.f32 %v192_v40  ;;  %v1142_v40 = vld [vmem:[%s1582_s12 + $0x30] sm:$0xff]  }
 0x12d   :  { %v1161_v41 = vpop.eup %1160 }
 0x12e   :  { %v194_v43 = vmul.f32 %v1161_v41, %v183_v31  ;;  %v902_v31 = vld [vmem:[%s1579_s9] ss:$0 sm:$0xff]  ;;  %v1143_v41 = vld [vmem:[%s1582_s12 + $0x38] sm:$0xff]  }
 0x130   :  { %v202_v45 = vmul.f32 %v890_v42, %v194_v43  ;;  %v1144_v42 = vld [vmem:[%s1584_s14] sm:$0xff]   ;;  %v1145_v43 = vld [vmem:[%s1584_s14 + $0x8] sm:$0xff]  }
 0x132   :  { %v210_v46 = vadd.f32 %v891_v44, %v202_v45  ;;  %v1146_v44 = vld [vmem:[%s1584_s14 + $0x10] sm:$0xff]   ;;  %v1147_v45 = vld [vmem:[%s1584_s14 + $0x18] sm:$0xff]  }
 0x134   :  { %v211_v47 = vmax.f32 %v210_v46, 0.0  ;;  %v1148_v46 = vld [vmem:[%s1584_s14 + $0x20] sm:$0xff]  }
 0x136   :  { %v212_v48 = vpack.c.bf16 %v211_v47, %v211_v47  ;;  %v1149_v47 = vld [vmem:[%s1584_s14 + $0x28] sm:$0xff]  }
 0x138   :  { %1029 = vmatmul.mubr.bf16.vlgmr.msra.gmra.mrb[0].mxu1 %v212_v48  ;;  %v379_v48 = vlaneseq }
 0x139   :  { %1048 = vmatprep.mubr.msk.bf16.mxu1 %vm1195_vm0, %v1194_v1  ;;  %1033 = vmatpush3.bf16.msra.mxu1 %v1136_v3 }
 0x13a   :  { %1034 = vmatprep.subr.bf16.mxu1 %v1194_v1  ;;  %v380_v49 = vshrl.u32 %v379_v48, 7 }
 0x13c   :  { %v381_v50 = vsub.s32 0, %v380_v49  ;;  %v385_v52 = vsub.s32 1, %v380_v49 }
 0x13d   :  { %1035 = vmatpush3.bf16.msra.mxu1 %v1137_v4 }
 0x13e   :  { %1036 = vmatprep.subr.bf16.mxu1 %v1194_v1  ;;  %v382_v53 = vrot.slane %v377_v51, %v381_v50  ;;  %v386_v54 = vrot.slane %v377_v51, %v385_v52 }
 0x141   :  { %1037 = vmatpush3.bf16.msra.mxu1 %v1138_v36 }
 0x142   :  { %1038 = vmatprep.subr.bf16.mxu1 %v1194_v1 }
 0x145   :  { %1039 = vmatpush3.bf16.msra.mxu1 %v1139_v37 }
 0x146   :  { %1040 = vmatprep.subr.bf16.mxu1 %v1194_v1 }
 0x149   :  { %1041 = vmatpush3.bf16.msra.mxu1 %v1140_v38 }
 0x14a   :  { %1042 = vmatprep.subr.bf16.mxu1 %v1194_v1 }
 0x14d   :  { %1043 = vmatpush3.bf16.msra.mxu1 %v1141_v39 }
 0x14e   :  { %1044 = vmatprep.subr.bf16.mxu1 %v1194_v1 }
 0x151   :  { %1045 = vmatpush3.bf16.msra.mxu1 %v1142_v40 }
 0x152   :  { %1046 = vmatprep.subr.bf16.mxu1 %v1194_v1 }
 0x155   :  { %1047 = vmatpush3.bf16.msra.mxu1 %v1143_v41 }
 0x156   :  { %1072 = vmatprep.subr.bf16.mxu1 %v1194_v1 }
 0x20b   :  { %v318_v6 = vpop.f32.mrb[0].mxu1 }
 0x20c   :  { %v319_v7 = vadd.f32 %v892_v5, %v318_v6  ;;  %v1030_v8 = vpop.f32.mrb[1].mxu1  ;;  %v1150_v5 = vld [vmem:[%s1584_s14 + $0x30] sm:$0xff]   ;;  %v1151_v6 = vld [vmem:[%s1584_s14 + $0x38] sm:$0xff]  }
 0x20d   :  { %v321_v9 = vpop.f32.mrb[2].mxu1  ;;  %v1153_v8 = vld [vmem:[%s1586_s16 + $0x8] sm:$0xff]  }
 0x20e   :  { %v324_v10 = vrot.slane %v319_v7, 4  ;;  %v1031_v11 = vpop.f32.mrb[3].mxu1  ;;  %v1154_v9 = vld [vmem:[%s1586_s16 + $0x10] sm:$0xff]  }
 0x20f   :  { %v1156_v11 = vld [vmem:[%s1586_s16 + $0x20] sm:$0xff]  }
 0x210   :  { %v325_v12 = vadd.f32 %v324_v10, %v319_v7  ;;  %v1155_v10 = vld [vmem:[%s1586_s16 + $0x18] sm:$0xff]  }
 0x212   :  { %v326_v13 = vrot.slane %v325_v12, 2 }
 0x214   :  { %v327_v14 = vadd.f32 %v326_v13, %v325_v12  ;;  %v1157_v12 = vld [vmem:[%s1586_s16 + $0x28] sm:$0xff]   ;;  %v919_v13 = vld [vmem:[%s1583_s13] ss:$0 sm:$0xff] }
 0x216   :  { %v328_v15 = vrot.slane %v327_v14, 1 }
 0x218   :  { %v329_v16 = vadd.f32 %v328_v15, %v327_v14 }
 0x21a   :  { %v330_v17 = vmul.f32 0.125, %v329_v16 }
 0x21c   :  { %v331_v18 = vsub.f32 %v319_v7, %v330_v17  ;;  %v1152_v7 = vld [vmem:[%s1586_s16] sm:$0xff]  }
 0x21e   :  { %v332_v19 = vmul.f32 %v331_v18, %v331_v18 }
 0x220   :  { %v333_v20 = vrot.slane %v332_v19, 4 }
 0x222   :  { %v334_v21 = vadd.f32 %v333_v20, %v332_v19 }
 0x224   :  { %v335_v22 = vrot.slane %v334_v21, 2 }
 0x226   :  { %v336_v23 = vadd.f32 %v335_v22, %v334_v21  ;;  %v1158_v21 = vld [vmem:[%s1586_s16 + $0x30] sm:$0xff]   ;;  %v1159_v22 = vld [vmem:[%s1586_s16 + $0x38] sm:$0xff]  }
 0x228   :  { %v337_v24 = vrot.slane %v336_v23, 1 }
 0x22a   :  { %v338_v25 = vadd.f32 %v337_v24, %v336_v23  ;;  %v928_v23 = vld [vmem:[%s1585_s15] ss:$0 sm:$0xff]  ;;  %s1197_s15 = smov [#allocation2]  }
 0x22b   :  { %s869_s16 = sshll.u32 %s1197_s15, 4  ;;  %s870_s16 = int_to_ptr.vmem [resolvable:$true] %s869_s16 }
 0x22c   :  { %v339_v26 = vmul.f32 0.125, %v338_v25  ;;  %s1170_s2 = scalar_lea.vmem %s870_s16, 128  ;;  %p1175_p1 = scmp.lt.s32.totalorder %s870_s16, %s870_s16 }
 0x22d   :  { %p1171_p0 = scmp.ne.s32.totalorder %s870_s16, %s1170_s2  ;;  %p1176_p2 = scmp.lt.s32.totalorder %s1170_s2, %s1170_s2 }
 0x22e   :  { %v340_v27 = vadd.f32 1e-05, %v339_v26 }
 0x22f   :  { %p1177_p3 = por %p1176_p2, %p1175_p1 }
 0x230   :  { %1162 = vrsqrt.f32 %v340_v27 }
 0x231   :  { %p1178_p4 = pnand %p1177_p3, %p1171_p0 }
 0x23a   :  { %v1163_v28 = vpop.eup %1162 }
 0x23b   :  { %v342_v30 = vmul.f32 %v1163_v28, %v331_v18 }
 0x23d   :  { %v350_v32 = vmul.f32 %v901_v29, %v342_v30 }
 0x23f   :  { %v358_v33 = vadd.f32 %v902_v31, %v350_v32 }
 0x241   :  { %v359_v34 = vmax.f32 %v358_v33, 0.0 }
 0x243   :  { %v360_v35 = vpack.c.bf16 %v359_v34, %v359_v34 }
 0x245   :  { %502 = vmatmul.mubr.bf16.vlgmr.msra.gmra.mrb[4].mxu0 %v360_v35 }
 0x246   :  { %1068 = vmatprep.mubr.msk.bf16.mxu0 %vm1195_vm0, %v1194_v1  ;;  %1053 = vmatpush3.bf16.msra.mxu0 %v1144_v42 }
 0x247   :  { %1054 = vmatprep.subr.bf16.mxu0 %v1194_v1 }
 0x24a   :  { %1055 = vmatpush3.bf16.msra.mxu0 %v1145_v43 }
 0x24b   :  { %1056 = vmatprep.subr.bf16.mxu0 %v1194_v1 }
 0x24e   :  { %1057 = vmatpush3.bf16.msra.mxu0 %v1146_v44 }
 0x24f   :  { %1058 = vmatprep.subr.bf16.mxu0 %v1194_v1 }
 0x252   :  { %1059 = vmatpush3.bf16.msra.mxu0 %v1147_v45 }
 0x253   :  { %1060 = vmatprep.subr.bf16.mxu0 %v1194_v1 }
 0x256   :  { %1061 = vmatpush3.bf16.msra.mxu0 %v1148_v46 }
 0x257   :  { %1062 = vmatprep.subr.bf16.mxu0 %v1194_v1 }
 0x25a   :  { %1063 = vmatpush3.bf16.msra.mxu0 %v1149_v47 }
 0x25b   :  { %1064 = vmatprep.subr.bf16.mxu0 %v1194_v1 }
 0x25e   :  { %1065 = vmatpush3.bf16.msra.mxu0 %v1150_v5 }
 0x25f   :  { %1066 = vmatprep.subr.bf16.mxu0 %v1194_v1 }
 0x262   :  { %1067 = vmatpush3.bf16.msra.mxu0 %v1151_v6 }
 0x318   :  { %v503_v55 = vpop.f32.mrb[4].mxu0 }
 0x319   :  { %v504_v56 = vadd.f32 %v503_v55, %v382_v53  ;;  %v505_v57 = vpop.f32.mrb[5].mxu0 }
 0x31a   :  { %v506_v58 = vadd.f32 %v505_v57, %v386_v54  ;;  %v507_v59 = vpop.f32.mrb[6].mxu0 }
 0x31b   :  { %861 = vst [vmem:[%s1589_s19] sm:$0xff] %v504_v56  ;;  %v508_v60 = vpop.f32.mrb[7].mxu0 }
 0x31c   :  { %v510_v61 = vmul.f32 0.5, %v506_v58  ;;  %862 = vst [vmem:[%s1589_s19 + $0x8] sm:$0xff] %v506_v58 }
 0x31e   :  { %v511_v62 = vmul.f32 1.442695, %v510_v61 }
 0x320   :  { %1164 = vpow2.f32 %v511_v62 }
 0x32a   :  { %v1165_v0 = vpop.eup %1164 }
 0x32b   :  { %v514_v2 = vmul.f32 %v1165_v0, %v513_v63 }
 0x32d   :  { %v515_v3 = vadd.f32 %v514_v2, %v504_v56 }
 0x32f   :  { %v516_v4 = vpack.c.bf16 %v515_v3, %v515_v3 }
 0x331   :  { %1049 = vmatmul.mubr.bf16.vlgmr.msra.gmra.mrb[4].mxu1 %v516_v4 }
 0x332   :  { %1088 = vmatprep.mubr.msk.bf16.mxu1 %vm1195_vm0, %v1194_v1  ;;  %1073 = vmatpush3.bf16.msra.mxu1 %v1152_v7 }
 0x333   :  { %1074 = vmatprep.subr.bf16.mxu1 %v1194_v1 }
 0x336   :  { %1075 = vmatpush3.bf16.msra.mxu1 %v1153_v8 }
 0x337   :  { %1076 = vmatprep.subr.bf16.mxu1 %v1194_v1 }
 0x33a   :  { %1077 = vmatpush3.bf16.msra.mxu1 %v1154_v9 }
 0x33b   :  { %1078 = vmatprep.subr.bf16.mxu1 %v1194_v1 }
 0x33e   :  { %1079 = vmatpush3.bf16.msra.mxu1 %v1155_v10 }
 0x33f   :  { %1080 = vmatprep.subr.bf16.mxu1 %v1194_v1 }
 0x342   :  { %1081 = vmatpush3.bf16.msra.mxu1 %v1156_v11 }
 0x343   :  { %1082 = vmatprep.subr.bf16.mxu1 %v1194_v1 }
 0x346   :  { %1083 = vmatpush3.bf16.msra.mxu1 %v1157_v12 }
 0x347   :  { %1084 = vmatprep.subr.bf16.mxu1 %v1194_v1 }
 0x34a   :  { %1085 = vmatpush3.bf16.msra.mxu1 %v1158_v21 }
 0x34b   :  { %1086 = vmatprep.subr.bf16.mxu1 %v1194_v1  ;;  %v937_v1 = vld [vmem:[%s1587_s17] ss:$0 sm:$0xff] }
 0x34e   :  { %1087 = vmatpush3.bf16.msra.mxu1 %v1159_v22 }
 0x404   :  { %v622_v14 = vpop.f32.mrb[4].mxu1 }
 0x405   :  { %v623_v15 = vadd.f32 %v919_v13, %v622_v14  ;;  %v1050_v16 = vpop.f32.mrb[5].mxu1 }
 0x406   :  { %v625_v17 = vpop.f32.mrb[6].mxu1 }
 0x407   :  { %v628_v18 = vmax.f32 %v623_v15, 0.0  ;;  %v1051_v19 = vpop.f32.mrb[7].mxu1 }
 0x409   :  { %v629_v20 = vpack.c.bf16 %v628_v18, %v628_v18 }
 0x40b   :  { %1069 = vmatmul.mubr.bf16.vlgmr.msra.gmra.mrb[8].mxu0 %v629_v20 }
 0x4de   :  { %v735_v24 = vpop.f32.mrb[8].mxu0 }
 0x4df   :  { %v736_v25 = vadd.f32 %v928_v23, %v735_v24  ;;  %v1070_v26 = vpop.f32.mrb[9].mxu0 }
 0x4e0   :  { %v738_v27 = vpop.f32.mrb[10].mxu0 }
 0x4e1   :  { %v741_v28 = vmax.f32 %v736_v25, 0.0  ;;  %v1071_v29 = vpop.f32.mrb[11].mxu0 }
 0x4e3   :  { %v742_v30 = vpack.c.bf16 %v741_v28, %v741_v28 }
 0x4e5   :  { %1089 = vmatmul.mubr.bf16.vlgmr.msra.gmra.mrb[8].mxu1 %v742_v30 }
 0x5b8   :  { %v848_v31 = vpop.f32.mrb[8].mxu1 }
 0x5b9   :  { %v849_v32 = vadd.f32 %v937_v1, %v848_v31  ;;  %v1090_v33 = vpop.f32.mrb[9].mxu1 }
 0x5ba   :  { %v851_v34 = vpop.f32.mrb[10].mxu1 }
 0x5bb   :  { %v946_v35 = vmul.f32 -1.442695, %v849_v32  ;;  %v1091_v36 = vpop.f32.mrb[11].mxu1 }
 0x5bd   :  { %1166 = vpow2.f32 %v946_v35 }
 0x5c7   :  { %v1167_v37 = vpop.eup %1166 }
 0x5c8   :  { %v857_v38 = vadd.f32 1.0, %v1167_v37 }
 0x5ca   :  { %1168 = vrcp.f32 %v857_v38 }
 0x5d4   :  { %v1169_v39 = vpop.eup %1168 }
 0x5d5   :  { %860 = vst [vmem:[#allocation2] sm:$0xff] %v1169_v39 }
 0x5d6   :  { %1181 = shalt.err (!%p1178_p4)
}
 0x5d7   :  { %s1182_s24 = scalar_lea.hbm %s1588_s18, 128 }
 0x5d8   :  { %p1183_p5 = scmp.ne.s32.totalorder %s1588_s18, %s1182_s24  ;;  %p1186_p6 = scmp.lt.u32.totalorder %s1182_s24, %s1588_s18 }
 0x5da   :  { %p1188_p7 = pnand %p1186_p6, %p1183_p5 }
 0x5dc   :  { %1191 = shalt.err (!%p1188_p7)
}
 0x5dd   :  { %872 = dma.vmem_to_hbm [thread:$0]  %s870_s16, 128, %s1588_s18, [#allocation3]  }
 0x5de   :  { %1192 = dma.done.wait [#allocation3], 128  }
 0x5df   :  { %1193 = vsyncadd [#allocation3], 4294967168 }
 0x5e0   :  { %880 = vsyncpa [#allocation3], 1 }

</bundles_post_ra>
